<compile_context>
chip_gen: v7x
topology: tpu7x:2x2x1
jax: 0.10.0
libtpu: 0.0.40
codegen_flags: <defaults>
</compile_context>

<pallas_src>
import jax
import jax.numpy as jnp
from jax.experimental import pallas as pl
from jax.experimental.pallas import tpu as pltpu


def decoder_kernel(latent_ref,    # (TB, L)    block of cells
                   w1_ref,        # (L, H)     Linear weight with eval-BatchNorm folded in
                   b1_ref,        # (1, H)     folded bias
                   lw_ref,        # (H, G*C)   gathered + flattened logit weights
                   rho_wt_ref,    # (H, NG)    rho weight, pre-transposed (MXU-native)
                   logit_ref,     # (TB, G*C)  out, lane-dense
                   rho_ref):      # (TB, NG)   out
    # Fused MLP: Linear + folded eval-BatchNorm + ReLU (Dropout is identity in eval).
    h = jnp.dot(latent_ref[...], w1_ref[...], preferred_element_type=jnp.float32)
    h = jnp.maximum(h + b1_ref[...], 0.0)
    # All selected genes' logits in one lane-dense GEMM: (TB, H) @ (H, G*C).
    logit_ref[...] = jnp.dot(h, lw_ref[...], preferred_element_type=jnp.float32)
    # rho over ALL genes: (TB, H) @ (H, NG).
    rho_ref[...] = jnp.dot(h, rho_wt_ref[...], preferred_element_type=jnp.float32)


def decoder_forward(latent, genes_oi, params, *, row_tile=256):
    W1 = params["W1"]              # (L, H)
    b1 = params["b1"]              # (1, H)
    bn_scale = params["bn_scale"]  # (1, H)  folded eval BatchNorm scale
    bn_shift = params["bn_shift"]  # (1, H)  folded eval BatchNorm shift
    rho_w = params["rho_w"]        # (NG, H)
    logit_w = params["logit_w"]    # (NG, H, C)

    B, L = latent.shape
    _, H = W1.shape
    NG, _, C = logit_w.shape
    G = genes_oi.shape[0]
    GC = G * C

    # ---- One-time wrapper-level weight prep (cheap XLA ops) ----------------------
    # Fold eval BatchNorm (+ Linear bias) into the Linear weights:
    #   (x @ W1 + b1) * s + t  ==  x @ (W1 * s) + (b1 * s + t)
    W1f = W1 * bn_scale                           # (L, H)
    b1f = b1 * bn_scale + bn_shift                # (1, H)
    # Pre-gather the selected genes' logit weights and flatten so the kernel does a
    # single lane-dense GEMM:  lw_flat[h, g*C + c] = logit_w[genes_oi[g], h, c].
    # (jnp.take clamps out-of-range indices, so no unchecked DMA from raw genes_oi.)
    lw_flat = jnp.transpose(jnp.take(logit_w, genes_oi, axis=0), (1, 0, 2))
    lw_flat = lw_flat.reshape(H, GC)              # (H, G*C)
    # Pre-transpose rho weight so the contraction is MXU-native.
    rho_wt = rho_w.T                              # (H, NG)

    # ---- Grid: tile batch (cell) rows only; each step is fully independent -------
    if B > row_tile and B % row_tile == 0:
        TB = row_tile                             # sublane-aligned row tile
    else:
        TB = B                                    # tiny batch -> single grid step
    grid = (pl.cdiv(B, TB),)

    itemsize = jnp.dtype(jnp.float32).itemsize
    block_bytes = (TB * L + L * H + H + H * GC + H * NG + TB * GC + TB * NG) * itemsize
    vmem_limit = int(min(32 * 1024 * 1024,
                         max(4 * 1024 * 1024, 2 * block_bytes + (1 << 20))))

    logit_flat, rho = pl.pallas_call(
        decoder_kernel,
        out_shape=(jax.ShapeDtypeStruct((B, GC), jnp.float32),
                   jax.ShapeDtypeStruct((B, NG), jnp.float32)),
        grid=grid,
        in_specs=[
            pl.BlockSpec((TB, L), lambda i: (i, 0)),   # latent rows for this step
            pl.BlockSpec((L, H), lambda i: (0, 0)),    # folded Linear weight
            pl.BlockSpec((1, H), lambda i: (0, 0)),    # folded bias
            pl.BlockSpec((H, GC), lambda i: (0, 0)),   # gathered logit weights
            pl.BlockSpec((H, NG), lambda i: (0, 0)),   # rho weight (transposed)
        ],
        out_specs=[
            pl.BlockSpec((TB, GC), lambda i: (i, 0)),  # lane-dense logit slab
            pl.BlockSpec((TB, NG), lambda i: (i, 0)),  # rho rows
        ],
        compiler_params=pltpu.CompilerParams(
            dimension_semantics=("parallel",),         # row tiles are independent
            vmem_limit_bytes=vmem_limit,
        ),
    )(latent, W1f, b1f, lw_flat, rho_wt)

    # Free reshape (no transpose / extra HBM round trip) to PyTorch layout [B, G, C].
    logit = logit_flat.reshape(B, G, C)
    return logit, rho


def make_params(key, n_latent, n_hidden, n_genes, n_output_components):
    k1, k2, k3, k4, k5, k6, k7, k8 = jax.random.split(key, 8)
    # Linear(n_latent, n_hidden): PyTorch init uniform(-1/sqrt(fan_in), 1/sqrt(fan_in)).
    bound = 1.0 / (n_latent ** 0.5)
    W1 = jax.random.uniform(k1, (n_latent, n_hidden), jnp.float32, -bound, bound)
    b1 = jax.random.uniform(k2, (1, n_hidden), jnp.float32, -bound, bound)
    # BatchNorm1d in eval mode, folded to per-feature scale/shift.  Buffers/params are
    # randomized (instead of the trivial gamma=1/beta=0/mean=0/var=1 defaults) so the
    # wrapper-level BN fold is actually exercised by the correctness check.
    eps = 1e-5
    gamma = jax.random.uniform(k5, (1, n_hidden), jnp.float32, 0.8, 1.2)
    beta = 0.1 * jax.random.normal(k6, (1, n_hidden), jnp.float32)
    running_mean = 0.1 * jax.random.normal(k7, (1, n_hidden), jnp.float32)
    running_var = jax.random.uniform(k8, (1, n_hidden), jnp.float32, 0.5, 1.5)
    bn_scale = gamma / jnp.sqrt(running_var + eps)
    bn_shift = beta - running_mean * bn_scale
    # rho_weight ~ uniform(-stdv, stdv), stdv = 1/sqrt(n_hidden)  (per __init__).
    stdv = 1.0 / (n_hidden ** 0.5)
    rho_w = jax.random.uniform(k3, (n_genes, n_hidden), jnp.float32, -stdv, stdv)
    # logit_weight: __init__ zeros this; randomized here for a non-trivial test.
    logit_w = 0.1 * jax.random.normal(
        k4, (n_genes, n_hidden, n_output_components), jnp.float32)
    return dict(W1=W1, b1=b1, bn_scale=bn_scale, bn_shift=bn_shift,
                rho_w=rho_w, logit_w=logit_w)


def reference_forward(latent, genes_oi, params):
    # Faithful (unfolded) forward of the PyTorch module in eval mode.
    h = latent @ params["W1"] + params["b1"]
    h = h * params["bn_scale"] + params["bn_shift"]
    h = jnp.maximum(h, 0.0)
    lw = jnp.take(params["logit_w"], genes_oi, axis=0)          # (G, H, C)
    logit = jnp.einsum("bh,ghc->bgc", h, lw)
    rho = h @ params["rho_w"].T
    return logit, rho


if __name__ == "__main__":
    # Small shapes consistent with the module.
    B = 8                  # batch (cells)
    n_latent = 16
    n_hidden = 32
    n_genes = 16
    n_output_components = 8
    G = 6                  # len(genes_oi)

    key = jax.random.PRNGKey(0)
    k_lat, k_par = jax.random.split(key)
    latent = jax.random.normal(k_lat, (B, n_latent), jnp.float32)
    genes_oi = jnp.array([3, 0, 7, 12, 5, 9], dtype=jnp.int32)
    params = make_params(k_par, n_latent, n_hidden, n_genes, n_output_components)

    logit, rho = jax.jit(decoder_forward)(latent, genes_oi, params)
    jax.block_until_ready((logit, rho))

    logit_ref, rho_ref = reference_forward(latent, genes_oi, params)
    assert logit.shape == (B, G, n_output_components)
    assert rho.shape == (B, n_genes)
    # The BN fold changes rounding order vs. the unfolded reference, and f32 matmuls
    # may run as bf16 MXU passes at default precision -> compare slightly looser than
    # exact-f32.
    assert jnp.allclose(logit, logit_ref, rtol=1e-2, atol=1e-2), \
        float(jnp.max(jnp.abs(logit - logit_ref)))
    assert jnp.allclose(rho, rho_ref, rtol=1e-2, atol=1e-2), \
        float(jnp.max(jnp.abs(rho - rho_ref)))

    print("KERNEL_OK")
</pallas_src>

<mosaic_0001>
module attributes {stable_mosaic.version = 11 : i64} {
  func.func @decoder_kernel(%arg0: i32, %arg1: memref<8x16xf32, #tpu.memory_space<vmem>>, %arg2: memref<16x32xf32, #tpu.memory_space<vmem>>, %arg3: memref<1x32xf32, #tpu.memory_space<vmem>>, %arg4: memref<32x48xf32, #tpu.memory_space<vmem>>, %arg5: memref<32x16xf32, #tpu.memory_space<vmem>>, %arg6: memref<8x48xf32, #tpu.memory_space<vmem>>, %arg7: memref<8x16xf32, #tpu.memory_space<vmem>>) attributes {dimension_semantics = [#tpu.dimension_semantics<parallel>], iteration_bounds = array<i64: 1>, scalar_prefetch = 0 : i64, scratch_operands = 0 : i64, tpu.core_type = #tpu.core_type<tc>, window_params = [{transform_indices = @transform_0, window_bounds = array<i64: 8, 16>}, {pipeline_mode = #tpu.pipeline_mode<synchronous>, transform_indices = @transform_1, window_bounds = array<i64: 16, 32>}, {pipeline_mode = #tpu.pipeline_mode<synchronous>, transform_indices = @transform_2, window_bounds = array<i64: 1, 32>}, {pipeline_mode = #tpu.pipeline_mode<synchronous>, transform_indices = @transform_3, window_bounds = array<i64: 32, 48>}, {pipeline_mode = #tpu.pipeline_mode<synchronous>, transform_indices = @transform_4, window_bounds = array<i64: 32, 16>}, {transform_indices = @transform_5, window_bounds = array<i64: 8, 48>}, {transform_indices = @transform_6, window_bounds = array<i64: 8, 16>}]} {
    %c0 = arith.constant 0 : index
    %c0_0 = arith.constant 0 : index
    %0 = vector.load %arg1[%c0, %c0_0] : memref<8x16xf32, #tpu.memory_space<vmem>>, vector<8x16xf32>
    %c0_1 = arith.constant 0 : index
    %c0_2 = arith.constant 0 : index
    %1 = vector.load %arg2[%c0_1, %c0_2] : memref<16x32xf32, #tpu.memory_space<vmem>>, vector<16x32xf32>
    %cst = arith.constant dense<0.000000e+00> : vector<8x32xf32>
    %2 = tpu.matmul %0, %1, %cst {dimension_numbers = #tpu.dot_dimension_numbers<[1], [0], [0], [1], [0, 0, 1, 1], [], []>} : vector<8x16xf32>, vector<16x32xf32>, vector<8x32xf32> -> vector<8x32xf32>
    %c0_3 = arith.constant 0 : index
    %c0_4 = arith.constant 0 : index
    %3 = vector.load %arg3[%c0_3, %c0_4] : memref<1x32xf32, #tpu.memory_space<vmem>>, vector<1x32xf32>
    %4 = vector.broadcast %3 : vector<1x32xf32> to vector<8x32xf32>
    %5 = arith.addf %2, %4 : vector<8x32xf32>
    %cst_5 = arith.constant 0.000000e+00 : f32
    %6 = vector.broadcast %cst_5 : f32 to vector<8x32xf32>
    %7 = arith.maximumf %5, %6 : vector<8x32xf32>
    %c0_6 = arith.constant 0 : index
    %c0_7 = arith.constant 0 : index
    %8 = vector.load %arg4[%c0_6, %c0_7] : memref<32x48xf32, #tpu.memory_space<vmem>>, vector<32x48xf32>
    %cst_8 = arith.constant dense<0.000000e+00> : vector<8x48xf32>
    %9 = tpu.matmul %7, %8, %cst_8 {dimension_numbers = #tpu.dot_dimension_numbers<[1], [0], [0], [1], [0, 0, 1, 1], [], []>} : vector<8x32xf32>, vector<32x48xf32>, vector<8x48xf32> -> vector<8x48xf32>
    %c0_9 = arith.constant 0 : index
    %c0_10 = arith.constant 0 : index
    %10 = vector.load %arg6[%c0_9, %c0_10] : memref<8x48xf32, #tpu.memory_space<vmem>>, vector<8x48xf32>
    tpu.vector_store %arg6[%c0_9, %c0_10], %9 {strides = array<i32>} : memref<8x48xf32, #tpu.memory_space<vmem>>, vector<8x48xf32>,
    %c0_11 = arith.constant 0 : index
    %c0_12 = arith.constant 0 : index
    %11 = vector.load %arg5[%c0_11, %c0_12] : memref<32x16xf32, #tpu.memory_space<vmem>>, vector<32x16xf32>
    %cst_13 = arith.constant dense<0.000000e+00> : vector<8x16xf32>
    %12 = tpu.matmul %7, %11, %cst_13 {dimension_numbers = #tpu.dot_dimension_numbers<[1], [0], [0], [1], [0, 0, 1, 1], [], []>} : vector<8x32xf32>, vector<32x16xf32>, vector<8x16xf32> -> vector<8x16xf32>
    %c0_14 = arith.constant 0 : index
    %c0_15 = arith.constant 0 : index
    %13 = vector.load %arg7[%c0_14, %c0_15] : memref<8x16xf32, #tpu.memory_space<vmem>>, vector<8x16xf32>
    tpu.vector_store %arg7[%c0_14, %c0_15], %12 {strides = array<i32>} : memref<8x16xf32, #tpu.memory_space<vmem>>, vector<8x16xf32>,
    return
  }
  func.func @transform_0(%arg0: i32) -> (i32, i32) {
    %c0_i32 = arith.constant 0 : i32
    %c0_i32_0 = arith.constant 0 : i32
    return %arg0, %c0_i32 : i32, i32
  }
  func.func @transform_1(%arg0: i32) -> (i32, i32) {
    %c0_i32 = arith.constant 0 : i32
    %c0_i32_0 = arith.constant 0 : i32
    %c0_i32_1 = arith.constant 0 : i32
    return %c0_i32, %c0_i32_0 : i32, i32
  }
  func.func @transform_2(%arg0: i32) -> (i32, i32) {
    %c0_i32 = arith.constant 0 : i32
    %c0_i32_0 = arith.constant 0 : i32
    %c0_i32_1 = arith.constant 0 : i32
    return %c0_i32, %c0_i32_0 : i32, i32
  }
  func.func @transform_3(%arg0: i32) -> (i32, i32) {
    %c0_i32 = arith.constant 0 : i32
    %c0_i32_0 = arith.constant 0 : i32
    %c0_i32_1 = arith.constant 0 : i32
    return %c0_i32, %c0_i32_0 : i32, i32
  }
  func.func @transform_4(%arg0: i32) -> (i32, i32) {
    %c0_i32 = arith.constant 0 : i32
    %c0_i32_0 = arith.constant 0 : i32
    %c0_i32_1 = arith.constant 0 : i32
    return %c0_i32, %c0_i32_0 : i32, i32
  }
  func.func @transform_5(%arg0: i32) -> (i32, i32) {
    %c0_i32 = arith.constant 0 : i32
    %c0_i32_0 = arith.constant 0 : i32
    return %arg0, %c0_i32 : i32, i32
  }
  func.func @transform_6(%arg0: i32) -> (i32, i32) {
    %c0_i32 = arith.constant 0 : i32
    %c0_i32_0 = arith.constant 0 : i32
    return %arg0, %c0_i32 : i32, i32
  }
}

</mosaic_0001>

<bundles_post_ra>
// kernel: decoder_forward.1
= control target key start
LH: loop header
LB: loop body
LE: loop exit
PB: predicated region body
PF: predicated region fallthrough
CT: control target
= control target key end

     0   :  { %v370_v2 = vmov 0.0|0.0   ;;  %vm371_vm0 = vmmov 0   ;;  %v372_v4 = vmov 0.0   ;;  %s465_s0 = inlined_call_operand.vmem [shape: f32[8,16], index: 0, kind: input, shape index: {}]   ;;  %s466_s1 = inlined_call_operand.vmem [shape: f32[16,32], index: 1, kind: input, shape index: {}]   ;;  %s467_s2 = inlined_call_operand.vmem [shape: f32[1,32], index: 2, kind: input, shape index: {}]   ;;  %s468_s3 = inlined_call_operand.vmem [shape: f32[32,48], index: 3, kind: input, shape index: {}]   ;;  %s469_s4 = inlined_call_operand.vmem [shape: f32[32,16], index: 4, kind: input, shape index: {}]   ;;  %s470_s5 = inlined_call_operand.vmem [shape: f32[8,48], index: 5, kind: output, shape index: {0}]   ;;  %s471_s6 = inlined_call_operand.hbm [shape: f32[8,16], index: 6, kind: output, shape index: {1}]  }
   0x1   :  { %v24_v0 = vld [vmem:[%s466_s1] sm:$0xff]  ;;  %v25_v1 = vld [vmem:[%s466_s1 + $0x8] sm:$0xff]  ;;  %327 = vmatprep.subr.bf16.mxu0 %v370_v2  ;;  %302 = vmatprep.mubr.msk.f32.mxu0 %vm371_vm0, %v372_v4 }
   0x2   :  { %v328_v3 = vpack.c.bf16 %v25_v1, %v24_v0  ;;  %v108_v5 = vld [vmem:[%s468_s3] sm:$0xff]  ;;  %v109_v6 = vld [vmem:[%s468_s3 + $0x8] sm:$0xff]  ;;  %330 = vmatprep.subr.bf16.mxu1 %v370_v2  ;;  %313 = vmatprep.mubr.msk.f32.mxu1 %vm371_vm0, %v372_v4 }
   0x3   :  { %v188_v7 = vld [vmem:[%s469_s4] sm:$0xff]  ;;  %v331_v8 = vpack.c.bf16 %v109_v6, %v108_v5  ;;  %v189_v9 = vld [vmem:[%s469_s4 + $0x8] sm:$0xff] }
   0x4   :  { %12 = vsyncpa [#allocation3], 0  ;;  %329 = vmatpush3.bf16.msra.mxu0 %v328_v3  ;;  %v23_v10 = vld [vmem:[%s465_s0] sm:$0xff]  ;;  %vm33_vm1 = vcmask 130048   ;;  %v337_v11 = vpack.c.bf16 %v189_v9, %v188_v7  ;;  %v110_v12 = vld [vmem:[%s468_s3 + $0x10] sm:$0xff]  ;;  %vm112_vm2 = vcmask 261120  }
   0x5   :  { %336 = vmatprep.subr.bf16.mxu0 %v370_v2  ;;  %332 = vmatpush3.bf16.msra.mxu1 %v331_v8  ;;  %v111_v13 = vld [vmem:[%s468_s3 + $0x18] sm:$0xff]  ;;  %v190_v14 = vld [vmem:[%s469_s4 + $0x10] sm:$0xff]  ;;  %v281_v18 = vld [vmem:[%s467_s2] ss:$0 sm:$0xff]  ;;  %s373_s3 = smov [#allocation2]   ;;  %vm186_vm3 = vcmask 392192  }
   0x6   :  { %333 = vmatprep.subr.bf16.mxu1 %v370_v2  ;;  %v334_v15 = vpack.c.bf16 %v111_v13, %v110_v12  ;;  %v191_v16 = vld [vmem:[%s469_s4 + $0x18] sm:$0xff]  ;;  %s271_s19 = sshll.u32 %s373_s3, 4  ;;  %s272_s19 = int_to_ptr.vmem [resolvable:$true] %s271_s19 }
   0x7   :  { %303 = vmatmul.mubr.msk.f32.vlgmr.msra.gmra.mrb[0].mxu0 %vm33_vm1, %v23_v10  ;;  %v340_v17 = vpack.c.bf16 %v191_v16, %v190_v14  ;;  %s346_s2 = scalar_lea.vmem %s272_s19, 128  ;;  %p351_p1 = scmp.lt.s32.totalorder %s272_s19, %s272_s19 }
   0x8   :  { %338 = vmatpush3.bf16.msra.mxu0 %v337_v11  ;;  %324 = vmatprep.mubr.msk.f32.mxu0 %vm371_vm0, %v372_v4  ;;  %p347_p0 = scmp.ne.s32.totalorder %s272_s19, %s346_s2  ;;  %p352_p2 = scmp.lt.s32.totalorder %s346_s2, %s346_s2 }
   0x9   :  { %339 = vmatprep.subr.bf16.mxu0 %v370_v2  ;;  %335 = vmatpush3.bf16.msra.mxu1 %v334_v15 }
   0xa   :  { %p353_p3 = por %p352_p2, %p351_p1 }
   0xc   :  { %341 = vmatpush3.bf16.msra.mxu0 %v340_v17  ;;  %p354_p4 = pnand %p353_p3, %p347_p0 }
  0xda   :  { %v103_v19 = vpop.f32.mrb[0].mxu0 }
  0xdb   :  { %v104_v20 = vadd.f32 %v281_v18, %v103_v19  ;;  %v304_v21 = vpop.f32.mrb[1].mxu0 }
  0xdd   :  { %v107_v22 = vmax.f32 %v104_v20, 0.0 }
  0xdf   :  { %314 = vmatmul.mubr.msk.f32.vlgmr.msra.gmra.mrb[0].mxu1 %vm112_vm2, %v107_v22  ;;  %325 = vmatmul.mubr.msk.f32.vlgmr.msra.gmra.mrb[2].mxu0 %vm112_vm2, %v107_v22 }
 0x1b2   :  { %v182_v23 = vpop.f32.mrb[0].mxu1  ;;  %v258_v24 = vpop.f32.mrb[2].mxu0 }
 0x1b3   :  { %187 = vst.msk [vmem:[%s470_s5] sm:$0xff] %vm186_vm3, %v182_v23  ;;  %v315_v25 = vpop.f32.mrb[1].mxu1  ;;  %v326_v26 = vpop.f32.mrb[3].mxu0 }
 0x1b4   :  { %262 = vst.msk [vmem:[#allocation2] sm:$0xff] %vm33_vm1, %v258_v24 }
 0x1b5   :  { %357 = shalt.err (!%p354_p4)
}
 0x1b6   :  { %s358_s23 = scalar_lea.hbm %s471_s6, 128 }
 0x1b7   :  { %p359_p5 = scmp.ne.s32.totalorder %s471_s6, %s358_s23  ;;  %p362_p6 = scmp.lt.u32.totalorder %s358_s23, %s471_s6 }
 0x1b9   :  { %p364_p7 = pnand %p362_p6, %p359_p5 }
 0x1bb   :  { %367 = shalt.err (!%p364_p7)
}
 0x1bc   :  { %274 = dma.vmem_to_hbm [thread:$0]  %s272_s19, 128, %s471_s6, [#allocation3]  }
 0x1bd   :  { %368 = dma.done.wait [#allocation3], 128  }
 0x1be   :  { %369 = vsyncadd [#allocation3], 4294967168 }
 0x1bf   :  { %280 = vsyncpa [#allocation3], 1 }

</bundles_post_ra>
